<compile_context>
chip_gen: v6e
topology: v6e:2x2x1
jax: 0.10.0
libtpu: 0.0.40
codegen_flags: <defaults>
</compile_context>

<pallas_src>
import functools
import math

import jax
import jax.numpy as jnp
from jax import lax
from jax.experimental import pallas as pl
from jax.experimental.pallas import tpu as pltpu

_NEG_BIG = -1000000000.0


def _make_kernel(*, scale, has_mask, mask_kv_tail, Lk, TK, probs_bf16):
    """Build the kernel body with static configuration baked in."""

    def kernel(*refs):
        if has_mask:
            (q_ref, k_ref, v_ref, mask_ref,
             ctx_ref, scores_ref, m_scr, l_scr, acc_scr) = refs
        else:
            (q_ref, k_ref, v_ref,
             ctx_ref, scores_ref, m_scr, l_scr, acc_scr) = refs
            mask_ref = None

        ki = pl.program_id(3)

        @pl.when(ki == 0)
        def _init():
            m_scr[...] = jnp.full_like(m_scr, -jnp.inf)
            l_scr[...] = jnp.zeros_like(l_scr)
            acc_scr[...] = jnp.zeros_like(acc_scr)

        q = q_ref[0, 0]        # (TQ, d_k)
        k = k_ref[0, 0]        # (TK, d_k)
        v = v_ref[0, 0]        # (TK, d_v)

        # Fold 1/sqrt(d_k) into Q (TQ x d_k multiply instead of TQ x TK).
        q = q * jnp.asarray(scale, dtype=q.dtype)

        # scores tile = Q @ K^T, contracting d_k vs d_k directly (no k.T).
        s = lax.dot_general(q, k, (((1,), (1,)), ((), ())),
                            preferred_element_type=jnp.float32)

        neg_big = jnp.float32(_NEG_BIG)
        if has_mask and mask_kv_tail:
            cols = lax.broadcasted_iota(jnp.int32, s.shape, 1)
            keep = (mask_ref[0, 0] != 0) & ((ki * TK + cols) < Lk)
            s = jnp.where(keep, s, neg_big)
        elif has_mask:
            keep = mask_ref[0, 0] != 0
            s = jnp.where(keep, s, neg_big)
        elif mask_kv_tail:
            cols = lax.broadcasted_iota(jnp.int32, s.shape, 1)
            s = jnp.where((ki * TK + cols) < Lk, s, neg_big)

        # The module returns the masked pre-softmax logits; emit in input
        # dtype.  Writes past Lq/Lk on edge tiles are clipped by Pallas.
        scores_ref[0, 0] = s.astype(scores_ref.dtype)

        if mask_kv_tail:
            # Zero garbage V rows from the (clipped) edge-tile DMA so they
            # cannot inject NaNs into the p @ V accumulation.
            rows = lax.broadcasted_iota(jnp.int32, (v.shape[0], 1), 0)
            v = jnp.where((ki * TK + rows) < Lk, v, 0)

        # Online softmax update (stats kept in f32).
        m_prev = m_scr[...]                               # (TQ, 1)
        m_new = jnp.maximum(m_prev, jnp.max(s, axis=-1, keepdims=True))
        alpha = jnp.exp(m_prev - m_new)
        if probs_bf16:
            # bf16 exp: ~2x EUP throughput on v6e/v7x when inputs are bf16.
            p = jnp.exp((s - m_new).astype(jnp.bfloat16))
            row_sum = jnp.sum(p, axis=-1, keepdims=True, dtype=jnp.float32)
        else:
            p = jnp.exp(s - m_new)                        # (TQ, TK) f32
            row_sum = jnp.sum(p, axis=-1, keepdims=True)
        l_scr[...] = alpha * l_scr[...] + row_sum
        acc_scr[...] = alpha * acc_scr[...] + jnp.dot(
            p.astype(v.dtype), v, preferred_element_type=jnp.float32)
        m_scr[...] = m_new

        @pl.when(ki == pl.num_programs(3) - 1)
        def _finalize():
            inv_l = pl.reciprocal(l_scr[...], approx=True)   # EUP slot, ~free
            ctx_ref[0, 0] = (acc_scr[...] * inv_l).astype(ctx_ref.dtype)

    return kernel


def scaled_dot_product_attention(Q, K, V, attn_mask, d_k):
    """Pallas implementation of ScaledDotProductAttention.forward.

    Q: [B, H, len_q, d_k]
    K: [B, H, len_k, d_k]
    V: [B, H, len_k, d_v]
    attn_mask: [B|1, H|1, len_q, len_k] (entries == 0 are masked) or None.
    Returns (context [B,H,len_q,d_v], masked pre-softmax scores [B,H,len_q,len_k]).
    """
    B, H, Lq, dk = Q.shape
    Lk = K.shape[2]
    dv = V.shape[3]
    assert dk == d_k

    # ---- Tile selection (no full-extent fallback on long sequences) -------
    # TQ up to 1024 (Q + acc resident over ki -> bigger TQ halves K/V
    # re-reads); TK up to 512.  Short axes use the full (exempt) extent; long
    # axes use a fixed (8,128)-aligned tile with a cdiv grid + in-kernel tail
    # masking.  Worst-case per-step VMEM stays a few MiB -> fits v7x's 64 MiB.
    TQ = Lq if Lq <= 1024 else 1024
    TK = Lk if Lk <= 512 else 512
    # Keep at least 2 parallel work units so megacore / v7x's two TCs engage.
    if B * H == 1 and Lq > 8:
        half = -(-Lq // 2)
        TQ = min(TQ, ((half + 7) // 8) * 8)

    grid = (B, H, pl.cdiv(Lq, TQ), pl.cdiv(Lk, TK))
    mask_kv_tail = (Lk % TK) != 0      # last kv tile overhangs -> mask it
    has_mask = attn_mask is not None
    probs_bf16 = Q.dtype == jnp.bfloat16   # bf16 exp only for bf16 inputs

    def qmap(b, h, qi, ki):
        return (b, h, qi, 0)

    def kmap(b, h, qi, ki):
        return (b, h, ki, 0)

    def smap(b, h, qi, ki):
        return (b, h, qi, ki)

    in_specs = [
        pl.BlockSpec((1, 1, TQ, dk), qmap),    # Q
        pl.BlockSpec((1, 1, TK, dk), kmap),    # K
        pl.BlockSpec((1, 1, TK, dv), kmap),    # V
    ]
    args = [Q, K, V]
    mask_bytes = 0
    if has_mask:
        # Ship the mask as int8: 4x less HBM read traffic than a float mask.
        mask_i8 = (attn_mask != 0).astype(jnp.int8)
        mB, mH = mask_i8.shape[0], mask_i8.shape[1]

        def mmap(b, h, qi, ki):
            # Reuse a broadcast mask across batch / heads.
            return (b if mB != 1 else 0, h if mH != 1 else 0, qi, ki)

        in_specs.append(pl.BlockSpec((1, 1, TQ, TK), mmap))
        args.append(mask_i8)
        mask_bytes = B * H * Lq * Lk  # re-DMA'd per (b,h,qi,ki) step

    kernel = _make_kernel(scale=1.0 / math.sqrt(d_k), has_mask=has_mask,
                          mask_kv_tail=mask_kv_tail, Lk=Lk, TK=TK,
                          probs_bf16=probs_bf16)

    out_shapes = (
        jax.ShapeDtypeStruct((B, H, Lq, dv), Q.dtype),   # context
        jax.ShapeDtypeStruct((B, H, Lq, Lk), Q.dtype),   # masked scores
    )

    itemsize = jnp.dtype(Q.dtype).itemsize
    cost = pl.CostEstimate(
        flops=2 * B * H * Lq * Lk * (dk + dv),
        transcendentals=B * H * Lq * Lk,
        bytes_accessed=(B * H * (Lq * dk + Lk * (dk + dv)) * itemsize
                        + mask_bytes
                        + B * H * Lq * (Lk + dv) * itemsize),
    )

    return pl.pallas_call(
        kernel,
        out_shape=out_shapes,
        grid_spec=pltpu.PrefetchScalarGridSpec(
            num_scalar_prefetch=0,
            grid=grid,
            in_specs=in_specs,
            out_specs=[
                pl.BlockSpec((1, 1, TQ, dv), qmap),    # context (resident over ki)
                pl.BlockSpec((1, 1, TQ, TK), smap),    # scores
            ],
            scratch_shapes=[
                pltpu.VMEM((TQ, 1), jnp.float32),      # running max m
                pltpu.VMEM((TQ, 1), jnp.float32),      # running denom l
                pltpu.VMEM((TQ, dv), jnp.float32),     # context accumulator
            ],
        ),
        compiler_params=pltpu.CompilerParams(
            dimension_semantics=("parallel", "parallel", "parallel", "arbitrary"),
            # Capped tiles keep per-step usage at a few MiB; 40 MiB leaves
            # headroom even on v7x's 64 MiB physical VMEM.
            vmem_limit_bytes=40 * 1024 * 1024,
        ),
        cost_estimate=cost,
    )(*args)


def _reference(Q, K, V, attn_mask, d_k):
    s = jnp.einsum("bhqd,bhkd->bhqk", Q, K) / math.sqrt(d_k)
    if attn_mask is not None:
        s = jnp.where(attn_mask == 0.0, _NEG_BIG, s)
    attn = jax.nn.softmax(s, axis=-1)
    ctx = jnp.einsum("bhqk,bhkd->bhqd", attn, V)
    return ctx, s


def _check(Q, K, V, attn_mask, d_k, name):
    ctx, scores = scaled_dot_product_attention(Q, K, V, attn_mask, d_k)
    jax.block_until_ready((ctx, scores))
    ctx_ref, scores_ref = _reference(Q, K, V, attn_mask, d_k)
    assert jnp.allclose(ctx, ctx_ref, atol=2e-3, rtol=2e-3), f"{name}: ctx mismatch"
    assert jnp.allclose(scores, scores_ref, atol=1e-3, rtol=1e-3), f"{name}: scores mismatch"


if __name__ == "__main__":
    key = jax.random.PRNGKey(0)

    # --- Case 1: small, mask present, tile == full extent ------------------
    B, H, Lq, Lk, d_k, d_v = 2, 4, 8, 8, 16, 16
    kq, kk, kv, km, key = jax.random.split(key, 5)
    Q = jax.random.normal(kq, (B, H, Lq, d_k), dtype=jnp.float32)
    K = jax.random.normal(kk, (B, H, Lk, d_k), dtype=jnp.float32)
    V = jax.random.normal(kv, (B, H, Lk, d_v), dtype=jnp.float32)
    attn_mask = (jax.random.uniform(km, (B, H, Lq, Lk)) > 0.25).astype(jnp.float32)
    _check(Q, K, V, attn_mask, d_k, "masked-small")

    # --- Case 2: mask is None (no-mask kernel variant) ---------------------
    _check(Q, K, V, None, d_k, "no-mask")

    # --- Case 3: long kv axis not divisible by the tile (cdiv + tail mask) -
    B2, H2, Lq2, Lk2 = 1, 2, 16, 600
    kq, kk, kv, km, key = jax.random.split(key, 5)
    Q2 = jax.random.normal(kq, (B2, H2, Lq2, d_k), dtype=jnp.float32)
    K2 = jax.random.normal(kk, (B2, H2, Lk2, d_k), dtype=jnp.float32)
    V2 = jax.random.normal(kv, (B2, H2, Lk2, d_v), dtype=jnp.float32)
    mask2 = (jax.random.uniform(km, (B2, 1, Lq2, Lk2)) > 0.25).astype(jnp.float32)
    _check(Q2, K2, V2, mask2, d_k, "masked-tail")

    print("KERNEL_OK")
</pallas_src>

<mosaic_0001>
module attributes {stable_mosaic.version = 11 : i64} {
  func.func @kernel(%arg0: i32, %arg1: i32, %arg2: i32, %arg3: i32, %arg4: memref<1x1x8x16xf32, #tpu.memory_space<vmem>>, %arg5: memref<1x1x8x16xf32, #tpu.memory_space<vmem>>, %arg6: memref<1x1x8x16xf32, #tpu.memory_space<vmem>>, %arg7: memref<1x1x8x8xi8, #tpu.memory_space<vmem>>, %arg8: memref<1x1x8x16xf32, #tpu.memory_space<vmem>>, %arg9: memref<1x1x8x8xf32, #tpu.memory_space<vmem>>, %arg10: memref<8x1xf32, #tpu.memory_space<vmem>>, %arg11: memref<8x1xf32, #tpu.memory_space<vmem>>, %arg12: memref<8x16xf32, #tpu.memory_space<vmem>>) attributes {dimension_semantics = [#tpu.dimension_semantics<parallel>, #tpu.dimension_semantics<parallel>, #tpu.dimension_semantics<parallel>, #tpu.dimension_semantics<arbitrary>], iteration_bounds = array<i64: 2, 4, 1, 1>, scalar_prefetch = 0 : i64, scratch_operands = 3 : i64, tpu.core_type = #tpu.core_type<tc>, window_params = [{transform_indices = @transform_0, window_bounds = array<i64: 1, 1, 8, 16>}, {transform_indices = @transform_1, window_bounds = array<i64: 1, 1, 8, 16>}, {transform_indices = @transform_2, window_bounds = array<i64: 1, 1, 8, 16>}, {transform_indices = @transform_3, window_bounds = array<i64: 1, 1, 8, 8>}, {transform_indices = @transform_4, window_bounds = array<i64: 1, 1, 8, 16>}, {transform_indices = @transform_5, window_bounds = array<i64: 1, 1, 8, 8>}]} {
    %c0_i32 = arith.constant 0 : i32
    %0 = arith.cmpi eq, %arg3, %c0_i32 : i32
    %1 = arith.extui %0 : i1 to i32
    %c0_i32_0 = arith.constant 0 : i32
    %2 = arith.cmpi ne, %1, %c0_i32_0 : i32
    scf.if %2 {
      %cst_39 = arith.constant 0xFF800000 : f32
      %46 = vector.broadcast %cst_39 : f32 to vector<8x1xf32>
      %c0_40 = arith.constant 0 : index
      %c0_41 = arith.constant 0 : index
      %47 = vector.load %arg10[%c0_40, %c0_41] : memref<8x1xf32, #tpu.memory_space<vmem>>, vector<8x1xf32>
      tpu.vector_store %arg10[%c0_40, %c0_41], %46 {strides = array<i32>} : memref<8x1xf32, #tpu.memory_space<vmem>>, vector<8x1xf32>,
      %cst_42 = arith.constant 0.000000e+00 : f32
      %48 = vector.broadcast %cst_42 : f32 to vector<8x1xf32>
      %c0_43 = arith.constant 0 : index
      %c0_44 = arith.constant 0 : index
      %49 = vector.load %arg11[%c0_43, %c0_44] : memref<8x1xf32, #tpu.memory_space<vmem>>, vector<8x1xf32>
      tpu.vector_store %arg11[%c0_43, %c0_44], %48 {strides = array<i32>} : memref<8x1xf32, #tpu.memory_space<vmem>>, vector<8x1xf32>,
      %cst_45 = arith.constant 0.000000e+00 : f32
      %50 = vector.broadcast %cst_45 : f32 to vector<8x16xf32>
      %c0_46 = arith.constant 0 : index
      %c0_47 = arith.constant 0 : index
      %51 = vector.load %arg12[%c0_46, %c0_47] : memref<8x16xf32, #tpu.memory_space<vmem>>, vector<8x16xf32>
      tpu.vector_store %arg12[%c0_46, %c0_47], %50 {strides = array<i32>} : memref<8x16xf32, #tpu.memory_space<vmem>>, vector<8x16xf32>,
    } else {
    }
    %c0 = arith.constant 0 : index
    %c0_1 = arith.constant 0 : index
    %c0_2 = arith.constant 0 : index
    %c0_3 = arith.constant 0 : index
    %3 = vector.load %arg4[%c0, %c0_1, %c0_2, %c0_3] : memref<1x1x8x16xf32, #tpu.memory_space<vmem>>, vector<1x1x8x16xf32>
    %4 = vector.shape_cast %3 : vector<1x1x8x16xf32> to vector<8x16xf32>
    %c0_4 = arith.constant 0 : index
    %c0_5 = arith.constant 0 : index
    %c0_6 = arith.constant 0 : index
    %c0_7 = arith.constant 0 : index
    %5 = vector.load %arg5[%c0_4, %c0_5, %c0_6, %c0_7] : memref<1x1x8x16xf32, #tpu.memory_space<vmem>>, vector<1x1x8x16xf32>
    %6 = vector.shape_cast %5 : vector<1x1x8x16xf32> to vector<8x16xf32>
    %c0_8 = arith.constant 0 : index
    %c0_9 = arith.constant 0 : index
    %c0_10 = arith.constant 0 : index
    %c0_11 = arith.constant 0 : index
    %7 = vector.load %arg6[%c0_8, %c0_9, %c0_10, %c0_11] : memref<1x1x8x16xf32, #tpu.memory_space<vmem>>, vector<1x1x8x16xf32>
    %8 = vector.shape_cast %7 : vector<1x1x8x16xf32> to vector<8x16xf32>
    %cst = arith.constant 2.500000e-01 : f32
    %9 = vector.broadcast %cst : f32 to vector<8x16xf32>
    %10 = arith.mulf %4, %9 : vector<8x16xf32>
    %cst_12 = arith.constant dense<0.000000e+00> : vector<8x8xf32>
    %11 = tpu.matmul %10, %6, %cst_12 {dimension_numbers = #tpu.dot_dimension_numbers<[1], [1], [0], [0], [0, 0, 1, 0], [], []>} : vector<8x16xf32>, vector<8x16xf32>, vector<8x8xf32> -> vector<8x8xf32>
    %c0_13 = arith.constant 0 : index
    %c0_14 = arith.constant 0 : index
    %c0_15 = arith.constant 0 : index
    %c0_16 = arith.constant 0 : index
    %12 = vector.load %arg7[%c0_13, %c0_14, %c0_15, %c0_16] : memref<1x1x8x8xi8, #tpu.memory_space<vmem>>, vector<1x1x8x8xi8>
    %13 = vector.shape_cast %12 : vector<1x1x8x8xi8> to vector<8x8xi8>
    %c0_i8 = arith.constant 0 : i8
    %14 = vector.broadcast %c0_i8 : i8 to vector<8x8xi8>
    %15 = arith.cmpi ne, %13, %14 : vector<8x8xi8>
    %cst_17 = arith.constant -1.000000e+09 : f32
    %16 = vector.broadcast %cst_17 : f32 to vector<8x8xf32>
    %17 = arith.select %15, %11, %16 : vector<8x8xi1>, vector<8x8xf32>
    %c0_18 = arith.constant 0 : index
    %c0_19 = arith.constant 0 : index
    %c0_20 = arith.constant 0 : index
    %c0_21 = arith.constant 0 : index
    %18 = vector.load %arg9[%c0_18, %c0_19, %c0_20, %c0_21] : memref<1x1x8x8xf32, #tpu.memory_space<vmem>>, vector<1x1x8x8xf32>
    %19 = vector.shape_cast %18 : vector<1x1x8x8xf32> to vector<8x8xf32>
    %20 = vector.shape_cast %17 : vector<8x8xf32> to vector<1x1x8x8xf32>
    tpu.vector_store %arg9[%c0_18, %c0_19, %c0_20, %c0_21], %20 {strides = array<i32>} : memref<1x1x8x8xf32, #tpu.memory_space<vmem>>, vector<1x1x8x8xf32>,
    %c0_22 = arith.constant 0 : index
    %c0_23 = arith.constant 0 : index
    %21 = vector.load %arg10[%c0_22, %c0_23] : memref<8x1xf32, #tpu.memory_space<vmem>>, vector<8x1xf32>
    %cst_24 = arith.constant dense<0xFF800000> : vector<8xf32>
    %22 = vector.multi_reduction <maximumf>, %17, %cst_24 [1] : vector<8x8xf32> to vector<8xf32>
    %23 = vector.shape_cast %22 : vector<8xf32> to vector<8x1xf32>
    %24 = arith.maximumf %21, %23 : vector<8x1xf32>
    %25 = arith.subf %21, %24 : vector<8x1xf32>
    %26 = math.exp %25 : vector<8x1xf32>
    %27 = vector.broadcast %24 : vector<8x1xf32> to vector<8x8xf32>
    %28 = arith.subf %17, %27 : vector<8x8xf32>
    %29 = math.exp %28 : vector<8x8xf32>
    %cst_25 = arith.constant dense<0.000000e+00> : vector<8xf32>
    %30 = vector.multi_reduction <add>, %29, %cst_25 [1] : vector<8x8xf32> to vector<8xf32>
    %31 = vector.shape_cast %30 : vector<8xf32> to vector<8x1xf32>
    %c0_26 = arith.constant 0 : index
    %c0_27 = arith.constant 0 : index
    %32 = vector.load %arg11[%c0_26, %c0_27] : memref<8x1xf32, #tpu.memory_space<vmem>>, vector<8x1xf32>
    %33 = arith.mulf %26, %32 : vector<8x1xf32>
    %34 = arith.addf %33, %31 : vector<8x1xf32>
    %c0_28 = arith.constant 0 : index
    %c0_29 = arith.constant 0 : index
    %35 = vector.load %arg11[%c0_28, %c0_29] : memref<8x1xf32, #tpu.memory_space<vmem>>, vector<8x1xf32>
    tpu.vector_store %arg11[%c0_28, %c0_29], %34 {strides = array<i32>} : memref<8x1xf32, #tpu.memory_space<vmem>>, vector<8x1xf32>,
    %c0_30 = arith.constant 0 : index
    %c0_31 = arith.constant 0 : index
    %36 = vector.load %arg12[%c0_30, %c0_31] : memref<8x16xf32, #tpu.memory_space<vmem>>, vector<8x16xf32>
    %37 = vector.broadcast %26 : vector<8x1xf32> to vector<8x16xf32>
    %38 = arith.mulf %37, %36 : vector<8x16xf32>
    %cst_32 = arith.constant dense<0.000000e+00> : vector<8x16xf32>
    %39 = tpu.matmul %29, %8, %cst_32 {dimension_numbers = #tpu.dot_dimension_numbers<[1], [0], [0], [1], [0, 0, 1, 1], [], []>} : vector<8x8xf32>, vector<8x16xf32>, vector<8x16xf32> -> vector<8x16xf32>
    %40 = arith.addf %38, %39 : vector<8x16xf32>
    %c0_33 = arith.constant 0 : index
    %c0_34 = arith.constant 0 : index
    %41 = vector.load %arg12[%c0_33, %c0_34] : memref<8x16xf32, #tpu.memory_space<vmem>>, vector<8x16xf32>
    tpu.vector_store %arg12[%c0_33, %c0_34], %40 {strides = array<i32>} : memref<8x16xf32, #tpu.memory_space<vmem>>, vector<8x16xf32>,
    %c0_35 = arith.constant 0 : index
    %c0_36 = arith.constant 0 : index
    %42 = vector.load %arg10[%c0_35, %c0_36] : memref<8x1xf32, #tpu.memory_space<vmem>>, vector<8x1xf32>
    tpu.vector_store %arg10[%c0_35, %c0_36], %24 {strides = array<i32>} : memref<8x1xf32, #tpu.memory_space<vmem>>, vector<8x1xf32>,
    %c0_i32_37 = arith.constant 0 : i32
    %43 = arith.cmpi eq, %arg3, %c0_i32_37 : i32
    %44 = arith.extui %43 : i1 to i32
    %c0_i32_38 = arith.constant 0 : i32
    %45 = arith.cmpi ne, %44, %c0_i32_38 : i32
    scf.if %45 {
      %c0_39 = arith.constant 0 : index
      %c0_40 = arith.constant 0 : index
      %46 = vector.load %arg11[%c0_39, %c0_40] : memref<8x1xf32, #tpu.memory_space<vmem>>, vector<8x1xf32>
      %47 = tpu.reciprocal %46 {approx = true} : vector<8x1xf32> -> vector<8x1xf32>
      %c0_41 = arith.constant 0 : index
      %c0_42 = arith.constant 0 : index
      %48 = vector.load %arg12[%c0_41, %c0_42] : memref<8x16xf32, #tpu.memory_space<vmem>>, vector<8x16xf32>
      %49 = vector.broadcast %47 : vector<8x1xf32> to vector<8x16xf32>
      %50 = arith.mulf %48, %49 : vector<8x16xf32>
      %c0_43 = arith.constant 0 : index
      %c0_44 = arith.constant 0 : index
      %c0_45 = arith.constant 0 : index
      %c0_46 = arith.constant 0 : index
      %51 = vector.load %arg8[%c0_43, %c0_44, %c0_45, %c0_46] : memref<1x1x8x16xf32, #tpu.memory_space<vmem>>, vector<1x1x8x16xf32>
      %52 = vector.shape_cast %51 : vector<1x1x8x16xf32> to vector<8x16xf32>
      %53 = vector.shape_cast %50 : vector<8x16xf32> to vector<1x1x8x16xf32>
      tpu.vector_store %arg8[%c0_43, %c0_44, %c0_45, %c0_46], %53 {strides = array<i32>} : memref<1x1x8x16xf32, #tpu.memory_space<vmem>>, vector<1x1x8x16xf32>,
    } else {
    }
    return
  }
  func.func @transform_0(%arg0: i32, %arg1: i32, %arg2: i32, %arg3: i32) -> (i32, i32, i32, i32) {
    %c0_i32 = arith.constant 0 : i32
    %c0_i32_0 = arith.constant 0 : i32
    return %arg0, %arg1, %arg2, %c0_i32 : i32, i32, i32, i32
  }
  func.func @transform_1(%arg0: i32, %arg1: i32, %arg2: i32, %arg3: i32) -> (i32, i32, i32, i32) {
    %c0_i32 = arith.constant 0 : i32
    %c0_i32_0 = arith.constant 0 : i32
    return %arg0, %arg1, %arg3, %c0_i32 : i32, i32, i32, i32
  }
  func.func @transform_2(%arg0: i32, %arg1: i32, %arg2: i32, %arg3: i32) -> (i32, i32, i32, i32) {
    %c0_i32 = arith.constant 0 : i32
    %c0_i32_0 = arith.constant 0 : i32
    return %arg0, %arg1, %arg3, %c0_i32 : i32, i32, i32, i32
  }
  func.func @transform_3(%arg0: i32, %arg1: i32, %arg2: i32, %arg3: i32) -> (i32, i32, i32, i32) {
    %c0_i32 = arith.constant 0 : i32
    return %arg0, %arg1, %arg2, %arg3 : i32, i32, i32, i32
  }
  func.func @transform_4(%arg0: i32, %arg1: i32, %arg2: i32, %arg3: i32) -> (i32, i32, i32, i32) {
    %c0_i32 = arith.constant 0 : i32
    %c0_i32_0 = arith.constant 0 : i32
    return %arg0, %arg1, %arg2, %c0_i32 : i32, i32, i32, i32
  }
  func.func @transform_5(%arg0: i32, %arg1: i32, %arg2: i32, %arg3: i32) -> (i32, i32, i32, i32) {
    %c0_i32 = arith.constant 0 : i32
    return %arg0, %arg1, %arg2, %arg3 : i32, i32, i32, i32
  }
}

</mosaic_0001>

<bundles_post_ra>
// kernel: tpu_custom_call.1
= control target key start
LH: loop header
LB: loop body
LE: loop exit
PB: predicated region body
PF: predicated region fallthrough
CT: control target
= control target key end

     0   :  { %s1619_s0 = inlined_call_operand.hbm [shape: f32[2,4,8,16], index: 0, kind: input, shape index: {}]   ;;  %s1620_s1 = inlined_call_operand.hbm [shape: f32[2,4,8,16], index: 1, kind: input, shape index: {}]   ;;  %s1621_s2 = inlined_call_operand.hbm [shape: f32[2,4,8,16], index: 2, kind: input, shape index: {}]   ;;  %s1622_s3 = inlined_call_operand.hbm [shape: s8[2,4,8,8], index: 3, kind: input, shape index: {}]   ;;  %s1623_s4 = inlined_call_operand.hbm [shape: f32[2,4,8,16], index: 4, kind: output, shape index: {0}]   ;;  %s1624_s5 = inlined_call_operand.hbm [shape: f32[2,4,8,8], index: 5, kind: output, shape index: {1}]  }
   0x1   :  { %1634 = sst [smem:[#allocation30_spill]] %s1620_s1 }
   0x2   :  { %11 = vsyncpa [#allocation6], 0 }
   0x3   :  { %13 = vsyncpa [#allocation6 + $0x1], 0 }
   0x4   :  { %14 = vsyncpa [#allocation9], 0 }
   0x5   :  { %16 = vsyncpa [#allocation9 + $0x1], 0 }
   0x6   :  { %17 = vsyncpa [#allocation12], 0 }
   0x7   :  { %19 = vsyncpa [#allocation12 + $0x1], 0 }
   0x8   :  { %20 = vsyncpa [#allocation7], 0 }
   0x9   :  { %22 = vsyncpa [#allocation7 + $0x1], 0 }
   0xa   :  { %23 = vsyncpa [#allocation15], 0 }
   0xb   :  { %25 = vsyncpa [#allocation15 + $0x1], 0  ;;  %s1336_s18 = smov 0   ;;  %s1338_s19 = smov 0  }
   0xc   :  { %s1340_s20 = smov 0   ;;  %s1342_s21 = smov 0  }
   0xd   :  { %s1344_s22 = smov 0   ;;  %s1346_s23 = smov 0  }
   0xe   :  { %s1348_s24 = smov 0   ;;  %s1350_s25 = smov 0  }
   0xf LB: > { %1635 = sst [smem:[#allocation21_spill]] %s1266_s18  ;;  %s1377_s26 = sadd.s32 4294967295, %s1294_s25   ;;  %s1294_s25 = sphi %s1350_s25, %s31_s25   ;;  %s1290_s24 = sphi %s1348_s24, %s1659_s24   ;;  %s1286_s23 = sphi %s1346_s23, %s1658_s23   ;;  %s1282_s22 = sphi %s1344_s22, %s1657_s22   ;;  %s1278_s21 = sphi %s1342_s21, %s1656_s21   ;;  %s1274_s20 = sphi %s1340_s20, %s1655_s20   ;;  %s1270_s19 = sphi %s1338_s19, %s1661_s19   ;;  %s1266_s18 = sphi %s1336_s18, %s1660_s18  }
  0x10   : > { %1636 = sst [smem:[#allocation22_spill]] %s1274_s20  ;;  %s891_s27 = sadd.s32 4294967294, %s1294_s25  }
  0x11   : > { %1637 = sst [smem:[#allocation23_spill]] %s1286_s23  ;;  %s53_s28 = sadd.s32 1, %s1286_s23 }
  0x12   : > { %1638 = sst [smem:[#allocation24_spill]] %s1290_s24  ;;  %s57_s29 = sadd.s32 1, %s1290_s24 }
  0x13   : > { %1639 = sst [smem:[#allocation25_spill]] %s1294_s25  ;;  %p55_p0 = scmp.ge.s32.totalorder %s53_s28, 4 }
  0x14   : > { %s68_s30 = sadd.s32 1, %s1274_s20  ;;  %p75_p1 = scmp.ne.s32.totalorder %s1274_s20, %s1270_s19 }
  0x15   : > { %p76_p2 = scmp.eq.s32.totalorder %s1294_s25, 0  ;;  %s1663_s28 = smov (%p55_p0, %s53_s28), 0 }
  0x16   : > { %1640 = sst [smem:[#allocation26_spill]] %s1663_s28  ;;  %s1665_s29 = smov (!%p55_p0, %s57_s29), %s1290_s24 }
  0x17   : > { %s62_s6 = ssub.s32 %s1286_s23, %s1663_s28  ;;  %p1391_p3 = por %p76_p2, %p75_p1 }
  0x18   : > { %p59_p4 = scmp.ge.s32.totalorder %s1665_s29, 2  ;;  %p81_p5 = scmp.ne.s32.totalorder %s1270_s19, %s1266_s18 }
  0x19   : > { %p82_p6 = scmp.eq.s32.totalorder %s1377_s26, 0  ;;  %p201_p7 = scmp.eq.s32.totalorder %s1377_s26, 7 }
  0x1a   : > { %s1667_s29 = smov (%p59_p4, %s1665_s29), 0  ;;  %p207_p10 = scmp.eq.s32.totalorder %s891_s27, 7 }
  0x1b   : > { %1642 = sst [smem:[#allocation27_spill]] %s1667_s29  ;;  %p1401_p8 = por %p82_p6, %p81_p5 }
  0x1c   : > { %p1405_p9 = por %p201_p7, %p75_p1  ;;  %s61_s10 = ssub.s32 %s1290_s24, %s1667_s29 }
  0x1d   : > { %s63_s11 = sor.u32 %s62_s6, %s61_s10  ;;  %p1411_p12 = por %p207_p10, %p81_p5 }
  0x1e   : > { %p66_p11 = scmp.eq.s32.totalorder %s63_s11, 0  ;;  %p970_p13 = scmp.lt.s32.totalorder %s1294_s25, 8 }
  0x1f   : > { %s1645_s12 = scalar_select %p1411_p12, 1, 0 }
  0x20   : > { %s1417_s13 = sand.u32 1, %s1274_s20   ;;  %s895_s16 = sshll.u32 %s1290_s24, 2 }
  0x21   : > { %1646 = sst [smem:[#allocation28_spill]] %s1645_s12  ;;  %s1423_s15 = sshll.u32 %s1417_s13, 3 }
  0x22   : > { %s1420_s14 = scalar_select %p66_p11, %s1274_s20, %s68_s30  }
  0x23   : > { %s1427_s17 = sadd.s32 %s1286_s23, %s895_s16  ;;  %p1431_p0 = pnand %p970_p13, %p1391_p3 }
  0x24   : > { %1647 = sst [smem:[#allocation29_spill]] %s1420_s14  ;;  %s1436_s6 = sshll.u32 %s1427_s17, 7 }
  0x25   : > { %s280_s10 = sand.u32 1, %s1294_s25   ;;  %s1649_s1 = sld [smem:[#allocation30_spill]] }
  0x26   : > { %s284_s28 = scalar_lea.vmem [#allocation8], %s1423_s15  ;;  %p906_p1 = scmp.ge.s32.totalorder %s1294_s25, 1 }
  0x27   : > { %s294_s24 = sshll.u32 %s284_s28, 4  ;;  %p342_p2 = scmp.lt.s32.totalorder %s1294_s25, 9  ;;  %s295_s24 = int_to_ptr.vmem [resolvable:$true] %s294_s24 }
  0x28   : > { %s1446_s7 = scalar_lea.sflag [#allocation9], %s280_s10  ;;  %p1050_p3 = pneg %p1431_p0 }
  0x29   : > { %s1061_s16 = scalar_lea.vmem %s295_s24, 128  ;;  %s1296_s23 = smov [#allocation8]  }
  0x2a   : > { %p1062_p4 = scmp.ne.s32.totalorder %s295_s24, %s1061_s16  ;;  %s1066_s14 = sshll.u32 %s1296_s23, 4  ;;  %s1067_s14 = int_to_ptr.vmem [resolvable:$false] %s1066_s14 }
  0x2b   : > { %s292_s29 = scalar_lea.hbm %s1649_s1, %s1436_s6  ;;  %s1068_s30 = scalar_lea.vmem %s1067_s14, 256 }
  0x2c   : > { %p1064_p5 = pnand %p1062_p4, %p1050_p3  ;;  %p1069_p7 = scmp.lt.s32.totalorder %s295_s24, %s1067_s14 }
  0x2d   : > { %p1070_p10 = scmp.lt.s32.totalorder %s1068_s30, %s1061_s16 }
  0x2e   : > { %p1065_p6 = pneg %p1064_p5 }
  0x2f   : > { %p1071_p11 = por %p1070_p10, %p1069_p7 }
  0x31   : > { %p1072_p13 = pnand %p1071_p11, %p1065_p6 }
  0x33   : > { %1075 = shalt.err (!%p1072_p13)
}
  0x34   : > { %956 = dma.hbm_to_vmem [thread:$0]  (!%p1431_p0), %s292_s29, 128, %s295_s24, %s1446_s7  }
  0x35   : > { %p1460_p4 = pnand %p906_p1, %p342_p2  ;;  %s271_s10 = scalar_lea.hbm %s1619_s0, %s1436_s6 }
  0x36   : > { %s263_s11 = scalar_lea.vmem [#allocation5], %s1423_s15  ;;  %s313_s20 = scalar_lea.hbm %s1621_s2, %s1436_s6 }
  0x37   : > { %s273_s16 = sshll.u32 %s263_s11, 4  ;;  %s260_s12 = scalar_lea.sflag [#allocation6], %s1417_s13  ;;  %s274_s16 = int_to_ptr.vmem [resolvable:$true] %s273_s16 }
  0x38   : > { %s1089_s18 = scalar_lea.vmem %s274_s16, 128  ;;  %s1297_s24 = smov [#allocation5]  }
  0x39   : > { %p1090_p5 = scmp.ne.s32.totalorder %s274_s16, %s1089_s18  ;;  %s1094_s29 = sshll.u32 %s1297_s24, 4  ;;  %s1095_s29 = int_to_ptr.vmem [resolvable:$false] %s1094_s29 }
  0x3a   : > { %s1096_s25 = scalar_lea.vmem %s1095_s29, 256  ;;  %p1097_p6 = scmp.lt.s32.totalorder %s274_s16, %s1095_s29 }
  0x3b   : > { %p1092_p1 = pnand %p1090_p5, %p1050_p3  ;;  %p1098_p7 = scmp.lt.s32.totalorder %s1096_s25, %s1089_s18 }
  0x3d   : > { %p1093_p2 = pneg %p1092_p1  ;;  %p1099_p10 = por %p1098_p7, %p1097_p6 }
  0x3f   : > { %p1100_p11 = pnand %p1099_p10, %p1093_p2 }
  0x41   : > { %1103 = shalt.err (!%p1100_p11)
}
  0x42   : > { %953 = dma.hbm_to_vmem [thread:$0]  (!%p1431_p0), %s271_s10, 128, %s274_s16, %s260_s12  }
  0x43   : > { %s305_s1 = scalar_lea.vmem [#allocation10], %s1423_s15  ;;  %s903_s14 = sshll.u32 %s1417_s13, 1 }
  0x44   : > { %s315_s28 = sshll.u32 %s305_s1, 4  ;;  %s1298_s18 = smov [#allocation10]   ;;  %s316_s28 = int_to_ptr.vmem [resolvable:$true] %s315_s28 }
  0x45   : > { %s1117_s11 = scalar_lea.vmem %s316_s28, 128  ;;  %s1122_s25 = sshll.u32 %s1298_s18, 4  ;;  %s1123_s25 = int_to_ptr.vmem [resolvable:$false] %s1122_s25 }
  0x46   : > { %p1118_p13 = scmp.ne.s32.totalorder %s316_s28, %s1117_s11  ;;  %s1124_s30 = scalar_lea.vmem %s1123_s25, 256 }
  0x47   : > { %p1125_p2 = scmp.lt.s32.totalorder %s316_s28, %s1123_s25  ;;  %p1126_p6 = scmp.lt.s32.totalorder %s1124_s30, %s1117_s11 }
  0x48   : > { %p1120_p5 = pnand %p1118_p13, %p1050_p3 }
  0x49   : > { %p1127_p7 = por %p1126_p6, %p1125_p2 }
  0x4a   : > { %p1121_p1 = pneg %p1120_p5 }
  0x4c   : > { %p1128_p10 = pnand %p1127_p7, %p1121_p1 }
  0x4e   : > { %1131 = shalt.err (!%p1128_p10)
}
  0x4f   : > { %959 = dma.hbm_to_vmem [thread:$0]  (!%p1431_p0), %s313_s20, 128, %s316_s28, %s1446_s7  }
  0x50   : > { %s905_s10 = sshll.u32 %s1427_s17, 5  ;;  %s326_s1 = scalar_lea.vmem [#allocation11], %s903_s14 }
  0x51   : > { %s335_s29 = scalar_lea.hbm %s1622_s3, %s905_s10  ;;  %s337_s11 = sshll.u32 %s326_s1, 4  ;;  %s338_s11 = int_to_ptr.vmem [resolvable:$true] %s337_s11 }
  0x52   : > { %s323_s18 = scalar_lea.sflag [#allocation12], %s1417_s13  ;;  %s1145_s25 = scalar_lea.vmem %s338_s11, 32 }
  0x53   : > { %p1146_p11 = scmp.ne.s32.totalorder %s338_s11, %s1145_s25  ;;  %s1299_s6 = smov [#allocation11]  }
  0x54   : > { %s1150_s30 = sshll.u32 %s1299_s6, 4  ;;  %s1151_s30 = int_to_ptr.vmem [resolvable:$false] %s1150_s30 }
  0x55   : > { %p1148_p13 = pnand %p1146_p11, %p1050_p3  ;;  %s1152_s12 = scalar_lea.vmem %s1151_s30, 64 }
  0x56   : > { %p1153_p1 = scmp.lt.s32.totalorder %s338_s11, %s1151_s30  ;;  %p1154_p2 = scmp.lt.s32.totalorder %s1152_s12, %s1145_s25 }
  0x57   : > { %p1149_p5 = pneg %p1148_p13 }
  0x58   : > { %p1155_p6 = por %p1154_p2, %p1153_p1 }
  0x5a   : > { %p1156_p7 = pnand %p1155_p6, %p1149_p5 }
  0x5c   : > { %1159 = shalt.err (!%p1156_p7)
}
  0x5d   : > { %962 = dma.hbm_to_vmem [thread:$0]  (!%p1431_p0), %s335_s29, 32, %s338_s11, %s323_s18  }
  0x5e   : > { %346 = sbr.rel (%p1460_p4) target bundleno = 891 (0x37b), region = 36  ;;  %s1505_s20 = sand.u32 (!%p1460_p4), 1, %s1270_s19  }
  0x5f   : > { %s1508_s13 = sshll.u32 (!%p1460_p4), %s1505_s20, 3  ;;  %s349_s17 = scalar_lea.sflag (!%p1460_p4), [#allocation6], %s1505_s20 }
  0x60   : > { %s352_s7 = scalar_lea.vmem (!%p1460_p4), [#allocation5], %s1508_s13 }
  0x63   : > { %1245 = dma.done.wait (%p1401_p8), %s349_s17, 128  }
  0x64   : > { %1247 = vsyncadd (%p1401_p8), %s349_s17, 4294967168  ;;  %s357_s27 = sand.u32 1, %s1377_s26   ;;  %s361_s28 = scalar_lea.vmem [#allocation8], %s1508_s13 }
  0x65   : > { %s358_s23 = scalar_lea.sflag [#allocation9], %s357_s27 }
  0x66   : > { %1249 = dma.done.wait (%p1401_p8), %s358_s23, 256  }
  0x67   : > { %1251 = vsyncadd (%p1401_p8), %s358_s23, 4294967040  ;;  %s910_s14 = sshll.u32 %s1505_s20, 1  ;;  %s370_s15 = scalar_lea.vmem [#allocation10], %s1508_s13 }
  0x68   : > { %s376_s10 = scalar_lea.sflag [#allocation12], %s1505_s20  ;;  %s379_s16 = scalar_lea.vmem [#allocation11], %s910_s14 }
  0x69   : > { %1253 = dma.done.wait (%p1401_p8), %s376_s10, 32  }
  0x6a   : > { %1255 = vsyncadd (%p1401_p8), %s376_s10, 4294967264  ;;  %vm435_vm0 = vcmask 130048   ;;  %v1300_v0 = vmov 0.0   ;;  %vm1301_vm1 = vmmov 0   ;;  %v438_v1 = vld [vmem:[%s361_s28] sm:$0xff]  ;;  %v437_v2 = vld [vmem:[%s352_s7] sm:$0xff] }
  0x6b   : > { %928 = vmatprep.subr.mxu0 %v1300_v0  ;;  %436 = vst.msk [vmem:[#allocation4] sm:$0xff] %vm435_vm0, %v1300_v0  ;;  %930 = vmatprep.mubr.msk.f32.mxu0 %vm1301_vm1, %v1300_v0  ;;  %v440_v3 = vmul.f32 0.25, %v437_v2  ;;  %v1302_v4 = vmov 0   ;;  %vm432_vm2 = vcmask 7168   ;;  %v1303_v5 = vmov -inf   ;;  %s425_s26 = scalar_lea.vmem [#allocation14], %s1508_s13 }
  0x6c   : > { %933 = vmatprep.subr.mxu1 %v1300_v0  ;;  %935 = vmatprep.mubr.msk.f32.mxu1 %vm1301_vm1, %v1300_v0  ;;  %433 = vst.msk [vmem:[#allocation2] sm:$0xff] %vm432_vm2, %v1303_v5  ;;  %434 = vst.msk [vmem:[#allocation3] sm:$0xff] %vm432_vm2, %v1300_v0  ;;  %v518_v6 = vld [vmem:[%s379_s16] sm:$0x3]  ;;  %vm524_vm5 = vcmask 64512   ;;  %v439_v17 = vld [vmem:[%s370_s15] sm:$0xff] }
  0x6d   : > { %929 = vmatpush3.xpose.msk.msra.mxu0 %vm435_vm0, %v438_v1  ;;  %1040 = vset.pattern.permute.xlu0 %v1302_v4  ;;  %vm519_vm3 = vnez %v518_v6  ;;  %s918_s8 = sshll.u32 %s1282_s22, 2  ;;  %s685_s25 = sshll.u32 %s425_s26, 4  ;;  %s686_s25 = int_to_ptr.vmem [resolvable:$true] %s685_s25 }
  0x6e   : > { %1041 = vset.pattern.permute.xlu1 %v1302_v4  ;;  %v520_v7 = vsel %vm519_vm3, 16843009, %v1302_v4  ;;  %934 = vmatpush3.msra.mxu1 %v439_v17  ;;  %s1547_s24 = sadd.s32 %s1278_s21, %s918_s8  ;;  %s652_s6 = scalar_lea.sflag [#allocation15], %s1505_s20 }
  0x6f   : > { %v521_v8 = vunpack.c.0.s8 %v520_v7  ;;  %s919_s29 = sshll.u32 %s1547_s24, 7  ;;  %s1160_s30 = scalar_lea.vmem %s686_s25, 128 }
  0x70   : > { %931 = vmatmul.mubr.msk.f32.vlgmr.msra.gmra.mxu0 %vm435_vm0, %v440_v3  ;;  %s683_s18 = scalar_lea.hbm %s1624_s5, %s919_s29  ;;  %p1161_p8 = scmp.ne.s32.totalorder %s686_s25, %s1160_s30 }
  0x71   : > { %vm522_vm4 = vcmp.ne.s32.totalorder %v521_v8, 0  ;;  %s1304_s21 = smov [#allocation14]  }
  0x72   : > { %p1162_p0 = pnand %p1161_p8, %p1405_p9  ;;  %s1164_s22 = sshll.u32 %s1304_s21, 4  ;;  %s1165_s22 = int_to_ptr.vmem [resolvable:$false] %s1164_s22 }
  0x73   : > { %v526_v13 = vld [vmem:[#allocation2] sm:$0xff]  ;;  %v545_v25 = vld [vmem:[#allocation3] sm:$0xff]  ;;  %s1166_s12 = scalar_lea.vmem %s1165_s22, 256  ;;  %p1167_p4 = scmp.lt.s32.totalorder %s686_s25, %s1165_s22 }
  0x74   : > { %p1163_p3 = pneg %p1162_p0  ;;  %p1168_p10 = scmp.lt.s32.totalorder %s1166_s12, %s1160_s30 }
  0x76   : > { %p1169_p11 = por %p1168_p10, %p1167_p4 }
  0x78   : > { %p1170_p13 = pnand %p1169_p11, %p1163_p3 }
 0x130   : > { %v514_v9 = vpop.f32.mrf.mxu0 }
 0x131   : > { %v523_v10 = vsel %vm522_vm4, %v514_v9, -1e+09 }
 0x132   : > { %v932_v11 = vpop.f32.mrf.mxu0  ;;  %v527_v12 = vsel %vm524_vm5, %v523_v10, -inf  ;;  %525 = vst.msk [vmem:[%s425_s26] sm:$0xff] %vm524_vm5, %v523_v10 }
 0x133   : > { %528 = vmax.xlane.f32.xlu0 %v527_v12 }
 0x1bc   : > { %v529_v14 = vpop.xlane.xlu0 %528 }
 0x1bd   : > { %v530_v15 = vmax.f32 %v526_v13, %v529_v14 }
 0x1bf   : > { %v531_v16 = vsub.f32 %v526_v13, %v530_v15  ;;  %632 = vst.msk [vmem:[#allocation2] sm:$0xff] %vm432_vm2, %v530_v15  ;;  %536 = vperm.xlu0 %1040, %v530_v15  }
 0x1c1   : > { %v532_v22 = vmul.f32 1.442695, %v531_v16 }
 0x23a   : > { %v537_v18 = vpop.permute.xlu0 %536 }
 0x23b   : > { %v539_v19 = vsub.f32 %v523_v10, %v537_v18 }
 0x23d   : > { %v540_v20 = vmul.f32 1.442695, %v539_v19 }
 0x23f   : > { %1042 = vpow2.f32 %v540_v20 }
 0x240   : > { %1044 = vpow2.f32 %v532_v22 }
 0x24c   : > { %v1043_v21 = vpop.eup %1042 }
 0x24d   : > { %936 = vmatmul.mubr.msk.f32.vlgmr.msra.gmra.mxu1 %vm524_vm5, %v1043_v21  ;;  %v542_v23 = vsel %vm524_vm5, %v1043_v21, 0.0  ;;  %v1045_v24 = vpop.eup %1044 }
 0x24e   : > { %543 = vadd.xlane.f32.xlu1 %v542_v23  ;;  %v546_v26 = vmul.f32 %v1045_v24, %v545_v25 }
 0x25f   : > { %553 = vperm.xlu1 %1041, %v1045_v24  }
 0x2d7   : > { %v544_v27 = vpop.xlane.xlu1 %543 }
 0x2d8   : > { %v547_v28 = vadd.f32 %v546_v26, %v544_v27 }
 0x2da   : > { %549 = vst.msk [vmem:[#allocation3] sm:$0xff] %vm432_vm2, %v547_v28 }
 0x2e1   : > { %v636_v29 = vld [vmem:[#allocation3] sm:$0xff] }
 0x2e2   : > { %1046 = vrcp.f32 %v636_v29 }
 0x2ef   : > { %v1047_v30 = vpop.eup %1046 }
 0x2f0   : > { %641 = vperm.xlu1 %1041, %v1047_v30  }
 0x2f1   : > { %1173 = shalt.err (!%p1170_p13)
}
 0x2f2   : > { %s1174_s17 = scalar_lea.hbm %s683_s18, 128  ;;  %s1178_s23 = scalar_lea.hbm %s1624_s5, 1024 }
 0x2f3   : > { %p1175_p5 = scmp.ne.s32.totalorder %s683_s18, %s1174_s17  ;;  %p1179_p6 = scmp.lt.s32.totalorder %s683_s18, %s1624_s5 }
 0x2f4   : > { %p1180_p7 = scmp.lt.s32.totalorder %s1178_s23, %s1174_s17 }
 0x2f5   : > { %p1176_p1 = pnand %p1175_p5, %p1405_p9 }
 0x2f6   : > { %p1181_p8 = por %p1180_p7, %p1179_p6 }
 0x2f7   : > { %p1177_p2 = pneg %p1176_p1 }
 0x2f9   : > { %p1182_p0 = pnand %p1181_p8, %p1177_p2 }
 0x2fb   : > { %1185 = shalt.err (!%p1182_p0)
}
 0x2fc   : > { %947 = dma.vmem_to_hbm [thread:$0]  (%p1405_p9), %s686_s25, 128, %s683_s18, %s652_s6   ;;  %v550_v31 = vld [vmem:[#allocation4] sm:$0xff]  ;;  %v554_v32 = vpop.permute.xlu1 %553 }
 0x2fd   : > { %v556_v33 = vmul.f32 %v554_v32, %v550_v31  ;;  %s418_s15 = scalar_lea.vmem [#allocation13], %s1508_s13  ;;  %s666_s8 = scalar_lea.hbm %s1623_s4, %s919_s29 }
 0x2fe   : > { %s668_s10 = sshll.u32 %s418_s15, 4  ;;  %s647_s1 = scalar_lea.sflag [#allocation7], %s1505_s20  ;;  %s669_s10 = int_to_ptr.vmem [resolvable:$true] %s668_s10 }
 0x2ff   : > { %s1186_s11 = scalar_lea.vmem %s669_s10, 128  ;;  %s1305_s18 = smov [#allocation13]  }
 0x300   : > { %p1187_p3 = scmp.ne.s32.totalorder %s669_s10, %s1186_s11  ;;  %s1190_s13 = sshll.u32 %s1305_s18, 4  ;;  %s1191_s13 = int_to_ptr.vmem [resolvable:$false] %s1190_s13 }
 0x301   : > { %s1192_s25 = scalar_lea.vmem %s1191_s13, 256  ;;  %p1193_p11 = scmp.lt.s32.totalorder %s669_s10, %s1191_s13 }
 0x302   : > { %p1188_p4 = pnand %p1187_p3, %p1405_p9  ;;  %p1194_p13 = scmp.lt.s32.totalorder %s1192_s25, %s1186_s11 }
 0x304   : > { %p1189_p10 = pneg %p1188_p4  ;;  %p1195_p5 = por %p1194_p13, %p1193_p11 }
 0x306   : > { %p1196_p1 = pnand %p1195_p5, %p1189_p10 }
 0x30d   : > { %v626_v34 = vpop.f32.mrf.mxu1 }
 0x30e   : > { %v630_v35 = vadd.f32 %v626_v34, %v556_v33 }
 0x30f   : > { %v937_v36 = vpop.f32.mrf.mxu1 }
 0x310   : > { %631 = vst.msk [vmem:[#allocation4] sm:$0xff] %vm435_vm0, %v630_v35 }
 0x317   : > { %v638_v37 = vld [vmem:[#allocation4] sm:$0xff] }
 0x36b   : > { %v642_v38 = vpop.permute.xlu1 %641 }
 0x36c   : > { %v644_v39 = vmul.f32 %v642_v38, %v638_v37 }
 0x36e   : > { %645 = vst.msk [vmem:[%s418_s15] sm:$0xff] %vm435_vm0, %v644_v39 }
 0x36f   : > { %1199 = shalt.err (!%p1196_p1)
}
 0x370   : > { %s1200_s24 = scalar_lea.hbm %s666_s8, 128  ;;  %s1204_s6 = scalar_lea.hbm %s1623_s4, 1024 }
 0x371   : > { %p1201_p2 = scmp.ne.s32.totalorder %s666_s8, %s1200_s24  ;;  %p1205_p8 = scmp.lt.s32.totalorder %s666_s8, %s1623_s4 }
 0x372   : > { %p1206_p0 = scmp.lt.s32.totalorder %s1204_s6, %s1200_s24 }
 0x373   : > { %p1202_p6 = pnand %p1201_p2, %p1405_p9 }
 0x374   : > { %p1207_p3 = por %p1206_p0, %p1205_p8 }
 0x375   : > { %p1203_p7 = pneg %p1202_p6 }
 0x377   : > { %p1208_p4 = pnand %p1207_p3, %p1203_p7 }
 0x379   : > { %1211 = shalt.err (!%p1208_p4)
}
 0x37a   : > { %946 = dma.vmem_to_hbm [thread:$0]  (%p1405_p9), %s669_s10, 128, %s666_s8, %s647_s1  }
 0x37b PF: > { %s1651_s22 = sld [smem:[#allocation25_spill]] }
 0x37c   : > { %s1652_s12 = sld [smem:[#allocation21_spill]] }
 0x381   : > { %p971_p10 = scmp.ge.s32.totalorder %s1651_s22, 2 }
 0x382   : > { %s697_s7 = sand.u32 1, %s1652_s12  }
 0x383   : > { %p964_p11 = pnand %p971_p10, %p1411_p12  ;;  %s698_s27 = scalar_lea.sflag [#allocation7], %s697_s7 }
 0x385   : > { %p965_p13 = pneg %p964_p11 }
 0x387   : > { %1257 = dma.done.wait (%p965_p13), %s698_s27, 128  }
 0x388   : > { %1259 = vsyncadd (%p965_p13), %s698_s27, 4294967168  ;;  %s707_s23 = scalar_lea.sflag [#allocation15], %s697_s7 }
 0x389   : > { %1261 = dma.done.wait (%p965_p13), %s707_s23, 128  }
 0x38a   : > { %1263 = vsyncadd (%p965_p13), %s707_s23, 4294967168  ;;  %s31_s25 = sadd.s32 1, %s1651_s22   ;;  %s1654_s9 = sld [smem:[#allocation22_spill]] }
 0x38b   : > { %p28_p5 = scmp.ge.s32.totalorder %s31_s25, 10   ;;  %s1655_s20 = sld [smem:[#allocation29_spill]] }
 0x38c   : > { %s1656_s21 = sld [smem:[#allocation23_spill]]  ;;  %s1660_s18 = smov %s1270_s19 }
 0x38d   : > { %s1657_s22 = sld [smem:[#allocation24_spill]]  ;;  %30 = sbr.rel (!%p28_p5) target bundleno = 15 (0xf), region = 143 }
 0x38e   : > { %s1658_s23 = sld [smem:[#allocation26_spill]] }
 0x38f   : > { %s1659_s24 = sld [smem:[#allocation27_spill]] }
 0x390   : > { %s1661_s19 = smov %s1654_s9 }
 0x392   :  { %712 = vsyncpa [#allocation6], 1 }
 0x393   :  { %714 = vsyncpa [#allocation6 + $0x1], 1 }
 0x394   :  { %715 = vsyncpa [#allocation9], 1 }
 0x395   :  { %717 = vsyncpa [#allocation9 + $0x1], 1 }
 0x396   :  { %718 = vsyncpa [#allocation12], 1 }
 0x397   :  { %720 = vsyncpa [#allocation12 + $0x1], 1 }
 0x398   :  { %721 = vsyncpa [#allocation7], 1 }
 0x399   :  { %723 = vsyncpa [#allocation7 + $0x1], 1 }
 0x39a   :  { %724 = vsyncpa [#allocation15], 1 }
 0x39b   :  { %726 = vsyncpa [#allocation15 + $0x1], 1 }

</bundles_post_ra>
